<compile_context>
chip_gen: v7x
topology: tpu7x:2x2x1
jax: 0.10.0
libtpu: 0.0.40
codegen_flags: <defaults>
</compile_context>

<pallas_src>
import math

import jax
import jax.numpy as jnp
from jax.experimental import pallas as pl
from jax.experimental.pallas import tpu as pltpu


_LANE = 128     # lane width: spatial tiles are multiples of this
_CHUNK = 512    # lane sub-chunk for the fused fc1 -> ReLU -> fc2 inner loop


def _round_up(x, m):
    return -(-x // m) * m


def _sublane_mult(itemsize):
    # sublane packing: f32 -> 8, bf16 -> 16, int8/fp8 -> 32
    return max(8, 32 // int(itemsize))


def _tile_vmem_bytes(sub, lane, itemsize):
    """VMEM footprint of a (sub, lane) tile including sublane/lane padding."""
    return (_round_up(max(int(sub), 1), _sublane_mult(itemsize))
            * _round_up(max(int(lane), 1), _LANE) * int(itemsize))


def _chunk_width(tw):
    return math.gcd(int(tw), _CHUNK)


def _step_vmem_bytes(tw, cw, C_in, C_hid, C_out, in_bytes, out_bytes, w_bytes):
    """Per-grid-step VMEM need (padded), incl. double-buffered activations and
    the (still double-buffered) grid-invariant weight/bias blocks."""
    need = 2 * _tile_vmem_bytes(C_in, tw, in_bytes)          # x tile x2 (pipeline)
    need += 2 * _tile_vmem_bytes(C_out, tw, out_bytes)       # out tile x2
    need += 2 * _tile_vmem_bytes(C_hid, cw, 4)               # fused hidden chunk + temps
    need += 2 * (_tile_vmem_bytes(C_hid, C_in, w_bytes)      # W1
                 + _tile_vmem_bytes(C_out, C_hid, w_bytes)   # W2
                 + _tile_vmem_bytes(C_hid, 1, 4)             # b1
                 + _tile_vmem_bytes(C_out, 1, 4))            # b2
    return need


def _physical_vmem_bytes():
    """Generation-aware physical VMEM per TensorCore (conservative fallback)."""
    try:
        info = pltpu.get_tpu_info()
        for attr in ("vmem_capacity_bytes", "vmem_bytes", "vmem_size_bytes"):
            v = getattr(info, attr, None)
            if v:
                return int(v)
    except Exception:
        pass
    return 64 * 1024 * 1024  # v7x per-TC VMEM: safe lower bound everywhere


def _pick_spatial_tile(HW, n_batch, C_in, C_hid, C_out,
                       in_bytes, out_bytes, w_bytes, budget_bytes, min_steps=4):
    """Largest lane-dense spatial tile that (a) fits the padded-VMEM budget,
    (b) wastes <12.5% on ragged padding, and (c) leaves >= min_steps grid
    steps for DMA pipelining and megacore occupancy.  If (c) cannot be met,
    falls back to the largest tile satisfying (a)+(b); final fallback 128."""
    candidates = (32768, 16384, 8192, 4096, 2048, 1024, 512, 384, 256, 128)
    best_fit = None
    for cand in candidates:
        if cand > max(HW, _LANE):
            continue
        hw_pad = _round_up(HW, cand)
        if HW >= _LANE and (hw_pad - HW) * 8 > HW:   # >12.5% padding waste
            continue
        need = _step_vmem_bytes(cand, _chunk_width(cand), C_in, C_hid, C_out,
                                in_bytes, out_bytes, w_bytes)
        if need > budget_bytes:
            continue
        if best_fit is None:
            best_fit = cand
        if n_batch * (hw_pad // cand) >= min_steps:
            return cand
    return best_fit if best_fit is not None else _LANE


def _make_mlp_kernel(tw, cw):
    n_chunks = tw // cw

    def kernel(x_ref, w1_ref, b1_ref, w2_ref, b2_ref, o_ref):
        # x_ref : (1, C_in, tw)   w1_ref: (C_hid, C_in)   b1_ref: (C_hid, 1) f32
        # w2_ref: (C_out, C_hid)  b2_ref: (C_out, 1) f32  o_ref : (1, C_out, tw)
        w1 = w1_ref[...]
        b1 = b1_ref[...]
        w2 = w2_ref[...]
        b2 = b2_ref[...]

        # Fused fc1 -> bias -> ReLU -> fc2 over lane sub-chunks: the f32 hidden
        # activation (C_hid, cw) stays in vregs instead of round-tripping the
        # full (C_hid, tw) tile through VMEM between layers.  Chunk offsets are
        # Python-static, so every load/store is lane-aligned and unmasked.
        for c in range(n_chunks):
            sl = pl.ds(c * cw, cw)
            xc = x_ref[0, :, sl]                                        # (C_in, cw)
            h = jnp.dot(w1, xc, preferred_element_type=jnp.float32) + b1
            h = jnp.maximum(h, 0.0)                                     # f32
            # h stays f32; if w2 is bf16 it is promoted, so the second
            # contraction also accumulates in f32 (no extra downcast of h).
            o = jnp.dot(w2, h, preferred_element_type=jnp.float32) + b2
            o_ref[0, :, sl] = o.astype(o_ref.dtype)

    return kernel


def mlp_pallas(x_nchw, w1, b1, w2, b2, *, tw=None, use_bf16=False):
    """1x1-conv MLP.  x_nchw: (N, C_in, H, W); w1: (C_hid, C_in); b1: (C_hid,);
    w2: (C_out, C_hid); b2: (C_out,).  Returns (N, C_out, H, W) in x's dtype."""
    N, C_in, H, W = x_nchw.shape
    C_hid = w1.shape[0]
    C_out = w2.shape[0]
    HW = H * W
    out_dtype = x_nchw.dtype

    if use_bf16:
        # Halve HBM input/weight traffic; all accumulation stays f32 in-kernel.
        x_nchw = x_nchw.astype(jnp.bfloat16)
        w1 = w1.astype(jnp.bfloat16)
        w2 = w2.astype(jnp.bfloat16)

    # NCHW -> (N, C, H*W) is a free reshape: no transpose, no layout copy.
    x3 = x_nchw.reshape(N, C_in, HW)
    b1c = b1.reshape(C_hid, 1).astype(jnp.float32)
    b2c = b2.reshape(C_out, 1).astype(jnp.float32)

    in_bytes = jnp.dtype(x3.dtype).itemsize
    out_bytes = jnp.dtype(out_dtype).itemsize
    w_bytes = jnp.dtype(w1.dtype).itemsize

    phys_vmem = _physical_vmem_bytes()
    # Tile budget ~= 1/4 of physical VMEM, capped at 32 MiB: bigger tiles on
    # v5e/v6e (128 MiB), conservative on v7x (64 MiB/TC).
    budget = min(32 * 1024 * 1024, max(8 * 1024 * 1024, phys_vmem // 4))

    if tw is None:
        tw = _pick_spatial_tile(HW, N, C_in, C_hid, C_out,
                                in_bytes, out_bytes, w_bytes, budget)
    assert tw % _LANE == 0, "spatial tile must be lane-dense (multiple of 128)"
    cw = _chunk_width(tw)

    # Ragged spatial extents: pad H*W up to a tile multiple (padded lanes are
    # computed then dropped), keeping stores lane-dense and the grid pipelined.
    HW_pad = _round_up(HW, tw)
    if HW_pad != HW:
        x3 = jnp.pad(x3, ((0, 0), (0, 0), (0, HW_pad - HW)))

    grid = (N, HW_pad // tw)
    kernel = _make_mlp_kernel(tw, cw)

    need = _step_vmem_bytes(tw, cw, C_in, C_hid, C_out,
                            in_bytes, out_bytes, w_bytes)
    # Scoped VMEM limit: pipeline need + headroom, capped at 75% of physical
    # VMEM so compiler scratch / spills still fit (matters on v7x).
    vmem_limit = int(min(int(phys_vmem * 0.75),
                         max(32 * 1024 * 1024, 2 * need + (2 << 20))))
    vmem_limit = max(vmem_limit, need + (2 << 20))

    flops = 2 * N * HW_pad * (C_in * C_hid + C_hid * C_out) + 3 * N * HW_pad * C_hid
    bytes_accessed = (x3.size * in_bytes + N * C_out * HW_pad * out_bytes
                      + (w1.size + w2.size) * w_bytes + (C_hid + C_out) * 4)

    # TODO(synk): single-buffer the grid-invariant w1/b1/w2/b2 blocks
    # (pipeline_mode=pl.Buffered(1)) once the top-level TPU grid pipeline
    # honors it, to reclaim one weight copy of VMEM for wide channel counts.
    out3 = pl.pallas_call(
        kernel,
        out_shape=jax.ShapeDtypeStruct((N, C_out, HW_pad), out_dtype),
        grid_spec=pltpu.PrefetchScalarGridSpec(
            num_scalar_prefetch=0,
            grid=grid,
            in_specs=[
                pl.BlockSpec((1, C_in, tw), lambda n, s: (n, 0, s)),   # x tile
                pl.BlockSpec((C_hid, C_in), lambda n, s: (0, 0)),      # W1 (resident)
                pl.BlockSpec((C_hid, 1), lambda n, s: (0, 0)),         # b1
                pl.BlockSpec((C_out, C_hid), lambda n, s: (0, 0)),     # W2 (resident)
                pl.BlockSpec((C_out, 1), lambda n, s: (0, 0)),         # b2
            ],
            out_specs=pl.BlockSpec((1, C_out, tw), lambda n, s: (n, 0, s)),
        ),
        compiler_params=pltpu.CompilerParams(
            dimension_semantics=("parallel", "parallel"),
            vmem_limit_bytes=vmem_limit,
        ),
        cost_estimate=pl.CostEstimate(
            flops=int(flops),
            transcendentals=0,
            bytes_accessed=int(bytes_accessed)),
    )(x3, w1, b1c, w2, b2c)

    if HW_pad != HW:
        out3 = out3[:, :, :HW]
    return out3.reshape(N, C_out, H, W)


def _trunc_normal(key, shape, std):
    # matches torch trunc_normal_(w, std=std) with default absolute bounds [-2, 2]
    lo, hi = -2.0 / std, 2.0 / std
    return std * jax.random.truncated_normal(key, lo, hi, shape, jnp.float32)


def init_mlp_params(key, network_depth, in_features, hidden_features, out_features):
    """Deterministic init mirroring Mlp._init_weights.  Weights kept in the
    natural (squeezed) 1x1-conv layout: (layer_out_channels, layer_in_channels)."""
    gain = (8 * network_depth) ** (-1 / 4)
    k1, k2 = jax.random.split(key)

    std1 = gain * math.sqrt(2.0 / float(in_features + hidden_features))
    w1 = _trunc_normal(k1, (hidden_features, in_features), std1)
    b1 = jnp.zeros((hidden_features,), jnp.float32)

    std2 = gain * math.sqrt(2.0 / float(hidden_features + out_features))
    w2 = _trunc_normal(k2, (out_features, hidden_features), std2)
    b2 = jnp.zeros((out_features,), jnp.float32)

    return w1, b1, w2, b2


if __name__ == "__main__":
    key = jax.random.PRNGKey(0)
    kx, kp, kxb = jax.random.split(key, 3)

    # small shapes consistent with the module's forward (NCHW input)
    N, C_in, H, W = 2, 4, 16, 16
    network_depth = 4
    hidden_features = 32
    out_features = C_in

    x = jax.random.normal(kx, (N, C_in, H, W), jnp.float32)
    w1, b1, w2, b2 = init_mlp_params(kp, network_depth, C_in,
                                     hidden_features, out_features)

    def reference(xin):
        n, c, h, w = xin.shape
        x2d = jnp.transpose(xin, (0, 2, 3, 1)).reshape(-1, c)
        r = jnp.maximum(x2d @ w1.T + b1, 0.0) @ w2.T + b2
        return jnp.transpose(r.reshape(n, h, w, out_features), (0, 3, 1, 2))

    ref = reference(x)
    out = jax.block_until_ready(mlp_pallas(x, w1, b1, w2, b2))
    assert out.shape == (N, out_features, H, W)
    assert jnp.allclose(out, ref, atol=1e-4, rtol=1e-4), \
        float(jnp.max(jnp.abs(out - ref)))

    # bf16-operand variant (halved HBM input/weight traffic), loose tolerance.
    out_bf16 = jax.block_until_ready(mlp_pallas(x, w1, b1, w2, b2, use_bf16=True))
    assert jnp.allclose(out_bf16, ref, atol=1e-1, rtol=1e-1)

    # Larger spatial extent with an explicit tile: exercises the in-kernel
    # multi-chunk fused fc1 -> ReLU -> fc2 path (n_chunks > 1).
    Hb = Wb = 32
    xb = jax.random.normal(kxb, (N, C_in, Hb, Wb), jnp.float32)
    refb = reference(xb)
    outb = jax.block_until_ready(mlp_pallas(xb, w1, b1, w2, b2, tw=1024))
    assert jnp.allclose(outb, refb, atol=1e-4, rtol=1e-4), \
        float(jnp.max(jnp.abs(outb - refb)))

    print("KERNEL_OK")
</pallas_src>

<mosaic_0001>
module attributes {stable_mosaic.version = 11 : i64} {
  func.func @kernel(%arg0: i32, %arg1: i32, %arg2: memref<1x4x128xf32, #tpu.memory_space<vmem>>, %arg3: memref<32x4xf32, #tpu.memory_space<vmem>>, %arg4: memref<32x1xf32, #tpu.memory_space<vmem>>, %arg5: memref<4x32xf32, #tpu.memory_space<vmem>>, %arg6: memref<4x1xf32, #tpu.memory_space<vmem>>, %arg7: memref<1x4x128xf32, #tpu.memory_space<vmem>>) attributes {dimension_semantics = [#tpu.dimension_semantics<parallel>, #tpu.dimension_semantics<parallel>], iteration_bounds = array<i64: 2, 2>, scalar_prefetch = 0 : i64, scratch_operands = 0 : i64, tpu.core_type = #tpu.core_type<tc>, window_params = [{transform_indices = @transform_0, window_bounds = array<i64: 1, 4, 128>}, {pipeline_mode = #tpu.pipeline_mode<synchronous>, transform_indices = @transform_1, window_bounds = array<i64: 32, 4>}, {pipeline_mode = #tpu.pipeline_mode<synchronous>, transform_indices = @transform_2, window_bounds = array<i64: 32, 1>}, {pipeline_mode = #tpu.pipeline_mode<synchronous>, transform_indices = @transform_3, window_bounds = array<i64: 4, 32>}, {pipeline_mode = #tpu.pipeline_mode<synchronous>, transform_indices = @transform_4, window_bounds = array<i64: 4, 1>}, {transform_indices = @transform_5, window_bounds = array<i64: 1, 4, 128>}]} {
    %c0 = arith.constant 0 : index
    %c0_0 = arith.constant 0 : index
    %0 = vector.load %arg3[%c0, %c0_0] : memref<32x4xf32, #tpu.memory_space<vmem>>, vector<32x4xf32>
    %c0_1 = arith.constant 0 : index
    %c0_2 = arith.constant 0 : index
    %1 = vector.load %arg4[%c0_1, %c0_2] : memref<32x1xf32, #tpu.memory_space<vmem>>, vector<32x1xf32>
    %c0_3 = arith.constant 0 : index
    %c0_4 = arith.constant 0 : index
    %2 = vector.load %arg5[%c0_3, %c0_4] : memref<4x32xf32, #tpu.memory_space<vmem>>, vector<4x32xf32>
    %c0_5 = arith.constant 0 : index
    %c0_6 = arith.constant 0 : index
    %3 = vector.load %arg6[%c0_5, %c0_6] : memref<4x1xf32, #tpu.memory_space<vmem>>, vector<4x1xf32>
    %c0_7 = arith.constant 0 : index
    %c0_8 = arith.constant 0 : index
    %c0_9 = arith.constant 0 : index
    %4 = vector.load %arg2[%c0_7, %c0_8, %c0_9] : memref<1x4x128xf32, #tpu.memory_space<vmem>>, vector<1x4x128xf32>
    %5 = vector.shape_cast %4 : vector<1x4x128xf32> to vector<4x128xf32>
    %cst = arith.constant dense<0.000000e+00> : vector<32x128xf32>
    %6 = tpu.matmul %0, %5, %cst {dimension_numbers = #tpu.dot_dimension_numbers<[1], [0], [0], [1], [0, 0, 1, 1], [], []>} : vector<32x4xf32>, vector<4x128xf32>, vector<32x128xf32> -> vector<32x128xf32>
    %7 = vector.broadcast %1 : vector<32x1xf32> to vector<32x128xf32>
    %8 = arith.addf %6, %7 : vector<32x128xf32>
    %cst_10 = arith.constant 0.000000e+00 : f32
    %9 = vector.broadcast %cst_10 : f32 to vector<32x128xf32>
    %10 = arith.maximumf %8, %9 : vector<32x128xf32>
    %cst_11 = arith.constant dense<0.000000e+00> : vector<4x128xf32>
    %11 = tpu.matmul %2, %10, %cst_11 {dimension_numbers = #tpu.dot_dimension_numbers<[1], [0], [0], [1], [0, 0, 1, 1], [], []>} : vector<4x32xf32>, vector<32x128xf32>, vector<4x128xf32> -> vector<4x128xf32>
    %12 = vector.broadcast %3 : vector<4x1xf32> to vector<4x128xf32>
    %13 = arith.addf %11, %12 : vector<4x128xf32>
    %c0_12 = arith.constant 0 : index
    %c0_13 = arith.constant 0 : index
    %c0_14 = arith.constant 0 : index
    %14 = vector.load %arg7[%c0_12, %c0_13, %c0_14] : memref<1x4x128xf32, #tpu.memory_space<vmem>>, vector<1x4x128xf32>
    %15 = vector.shape_cast %14 : vector<1x4x128xf32> to vector<4x128xf32>
    %16 = vector.shape_cast %13 : vector<4x128xf32> to vector<1x4x128xf32>
    tpu.vector_store %arg7[%c0_12, %c0_13, %c0_14], %16 {strides = array<i32>} : memref<1x4x128xf32, #tpu.memory_space<vmem>>, vector<1x4x128xf32>,
    return
  }
  func.func @transform_0(%arg0: i32, %arg1: i32) -> (i32, i32, i32) {
    %c0_i32 = arith.constant 0 : i32
    %c0_i32_0 = arith.constant 0 : i32
    return %arg0, %c0_i32, %arg1 : i32, i32, i32
  }
  func.func @transform_1(%arg0: i32, %arg1: i32) -> (i32, i32) {
    %c0_i32 = arith.constant 0 : i32
    %c0_i32_0 = arith.constant 0 : i32
    %c0_i32_1 = arith.constant 0 : i32
    return %c0_i32, %c0_i32_0 : i32, i32
  }
  func.func @transform_2(%arg0: i32, %arg1: i32) -> (i32, i32) {
    %c0_i32 = arith.constant 0 : i32
    %c0_i32_0 = arith.constant 0 : i32
    %c0_i32_1 = arith.constant 0 : i32
    return %c0_i32, %c0_i32_0 : i32, i32
  }
  func.func @transform_3(%arg0: i32, %arg1: i32) -> (i32, i32) {
    %c0_i32 = arith.constant 0 : i32
    %c0_i32_0 = arith.constant 0 : i32
    %c0_i32_1 = arith.constant 0 : i32
    return %c0_i32, %c0_i32_0 : i32, i32
  }
  func.func @transform_4(%arg0: i32, %arg1: i32) -> (i32, i32) {
    %c0_i32 = arith.constant 0 : i32
    %c0_i32_0 = arith.constant 0 : i32
    %c0_i32_1 = arith.constant 0 : i32
    return %c0_i32, %c0_i32_0 : i32, i32
  }
  func.func @transform_5(%arg0: i32, %arg1: i32) -> (i32, i32, i32) {
    %c0_i32 = arith.constant 0 : i32
    %c0_i32_0 = arith.constant 0 : i32
    return %arg0, %c0_i32, %arg1 : i32, i32, i32
  }
}

</mosaic_0001>

<bundles_post_ra>
// kernel: tpu_custom_call.1
= control target key start
LH: loop header
LB: loop body
LE: loop exit
PB: predicated region body
PF: predicated region fallthrough
CT: control target
= control target key end

     0   :  { %10 = vsyncpa [#allocation3], 0  ;;  %s992_s0 = inlined_call_operand.vmem [shape: f32[2,4,256], index: 0, kind: input, shape index: {}]   ;;  %s993_s1 = inlined_call_operand.vmem [shape: f32[32,4], index: 1, kind: input, shape index: {}]   ;;  %s994_s2 = inlined_call_operand.vmem [shape: f32[32,1], index: 2, kind: input, shape index: {}]   ;;  %s995_s3 = inlined_call_operand.vmem [shape: f32[4,32], index: 3, kind: input, shape index: {}]   ;;  %s996_s4 = inlined_call_operand.vmem [shape: f32[4,1], index: 4, kind: input, shape index: {}]   ;;  %s997_s5 = inlined_call_operand.hbm [shape: f32[2,4,256], index: 5, kind: output, shape index: {}]  }
   0x1   :  { %12 = vsyncpa [#allocation3 + $0x1], 0  ;;  %s821_s18 = smov 0   ;;  %s823_s19 = smov 0  }
   0x2   :  { %s825_s20 = smov 0   ;;  %s827_s21 = smov 0  }
   0x3   :  { %s829_s22 = smov 0   ;;  %s831_s23 = smov 0  }
   0x4   :  { %s833_s24 = smov 0   ;;  %s835_s25 = smov 0  }
   0x5 LB: > { %s559_s26 = sadd.s32 4294967295, %s784_s25   ;;  %s560_s27 = sadd.s32 4294967294, %s784_s25   ;;  %s784_s25 = sphi %s835_s25, %s18_s25   ;;  %s780_s24 = sphi %s833_s24, %s1009_s24   ;;  %s776_s23 = sphi %s831_s23, %s1008_s23   ;;  %s772_s22 = sphi %s829_s22, %s1007_s22   ;;  %s768_s21 = sphi %s827_s21, %s1006_s21   ;;  %s764_s20 = sphi %s825_s20, %s1005_s20   ;;  %s760_s19 = sphi %s823_s19, %s1004_s19   ;;  %s756_s18 = sphi %s821_s18, %s1003_s18  }
   0x6   : > { %s27_s28 = sadd.s32 1, %s776_s23  ;;  %s30_s29 = sadd.s32 1, %s780_s24 }
   0x7   : > { %p28_p0 = scmp.ge.s32.totalorder %s27_s28, 2  ;;  %p161_p1 = scmp.ne.s32.totalorder %s764_s20, %s760_s19 }
   0x8   : > { %p162_p2 = scmp.eq.s32.totalorder %s559_s26, 3  ;;  %p167_p5 = scmp.ne.s32.totalorder %s760_s19, %s756_s18 }
   0x9   : > { %s1011_s28 = smov (%p28_p0, %s27_s28), 0  ;;  %s1013_s29 = smov (!%p28_p0, %s30_s29), %s780_s24 }
   0xa   : > { %s147_s30 = ssub.s32 %s776_s23, %s1011_s28  ;;  %p872_p3 = por %p162_p2, %p161_p1 }
   0xb   : > { %p32_p4 = scmp.ge.s32.totalorder %s1013_s29, 2  ;;  %p168_p6 = scmp.eq.s32.totalorder %s560_s27, 3 }
   0xc   : > { %p563_p7 = scmp.ge.s32.totalorder %s784_s25, 1  ;;  %p209_p9 = scmp.lt.s32.totalorder %s784_s25, 5 }
   0xd   : > { %s1015_s29 = smov (%p32_p4, %s1013_s29), 0  ;;  %p881_p8 = por %p168_p6, %p167_p5 }
   0xe   : > { %1000 = sst [smem:[#allocation5_spill]] %s1015_s29  ;;  %s146_s8 = ssub.s32 %s780_s24, %s1015_s29 }
   0xf   : > { %s151_s9 = sadd.s32 1, %s764_s20  ;;  %s148_s10 = sor.u32 %s147_s30, %s146_s8 }
  0x10   : > { %p210_p10 = pnand %p563_p7, %p209_p9  ;;  %p149_p11 = scmp.eq.s32.totalorder %s148_s10, 0 }
  0x11   : > { %p240_p12 = scmp.lt.s32.totalorder (!%p210_p10), %s772_s22, 1  ;;  %p242_p13 = scmp.lt.s32.totalorder (!%p210_p10), %s768_s21, 1  ;;  %v248_v0 = vld [vmem:[%s993_s1] sm:$0xff] (!%p210_p10)  ;;  %vm279_vm0 = vcmask (!%p210_p10), 31744   ;;  %v786_v2 = vmov (!%p210_p10), 0   ;;  %v254_v3 = vld [vmem:[%s994_s2 + $0x10] sm:$0xff] (!%p210_p10) }
  0x12   : > { %s890_s11 = scalar_select %p149_p11, %s764_s20, %s151_s9  }
  0x13   : > { %213 = sbr.rel (%p210_p10) target bundleno = 489 (0x1e9), region = 40  ;;  %590 = vmatprep.mubr.msk.f32.mxu0 (!%p210_p10), %vm279_vm0, %v248_v0  ;;  %v252_v1 = vld [vmem:[%s994_s2] sm:$0xff] (!%p210_p10)  ;;  %688 = vset.pattern.permute.xlu0 (!%p210_p10), %v786_v2  ;;  %v253_v4 = vld [vmem:[%s994_s2 + $0x8] sm:$0xff] (!%p210_p10)  ;;  %v255_v5 = vld [vmem:[%s994_s2 + $0x18] sm:$0xff] (!%p210_p10)  ;;  %vm292_vm1 = vcmask (!%p210_p10), 1043456   ;;  %v787_v11 = vmov (!%p210_p10), 0.0|0.0  }
  0x14   : > { %689 = vset.pattern.permute.xlu1 (!%p210_p10), %v786_v2  ;;  %261 = vperm.xlu0 (!%p210_p10), %688, %v252_v1   ;;  %v249_v7 = vld [vmem:[%s993_s1 + $0x8] sm:$0xff] (!%p210_p10)  ;;  %v257_v8 = vld [vmem:[%s996_s4] sm:$0xf] (!%p210_p10)  ;;  %v250_v9 = vld [vmem:[%s993_s1 + $0x10] sm:$0xff] (!%p210_p10)  ;;  %vm788_vm2 = vmmov (!%p210_p10), 0   ;;  %v789_v12 = vmov (!%p210_p10), 0.0  }
  0x15   : > { %271 = vperm.xlu1 (!%p210_p10), %689, %v254_v3   ;;  %v251_v10 = vld [vmem:[%s993_s1 + $0x18] sm:$0xff] (!%p210_p10)  ;;  %607 = vmatprep.subr.bf16.mxu1 (!%p210_p10), %v787_v11  ;;  %v256_v31 = vld [vmem:[%s995_s3] sm:$0xf] (!%p210_p10)  ;;  %vm390_vm3 = vcmask (!%p210_p10), 261120  }
  0x16   : > { %604 = vmatprep.mubr.msk.f32.mxu1 (!%p210_p10), %vm788_vm2, %v789_v12 }
  0x18   : > { %266 = vperm.xlu0 (!%p210_p10), %688, %v253_v4  }
  0x19   : > { %276 = vperm.xlu1 (!%p210_p10), %689, %v255_v5  }
  0x1a   : > { %s241_s16 = scalar_select %p240_p12, %s772_s22, 1 }
  0x1b   : > { %s243_s27 = scalar_select %p242_p13, %s768_s21, 1 }
  0x1c   : > { %s565_s30 = sshll.u32 %s241_s16, 1  ;;  %387 = vperm.xlu0 %688, %v257_v8  }
  0x1d   : > { %s245_s13 = sadd.s32 %s565_s30, %s243_s27  ;;  %s790_s30 = smov [#allocation2]  }
  0x1e   : > { %s566_s14 = sshll.u32 %s245_s13, 2  ;;  %s694_s12 = sshll.u32 %s790_s30, 4  ;;  %s695_s12 = int_to_ptr.vmem [resolvable:$false] %s694_s12 }
  0x1f   : > { %s247_s17 = scalar_lea.vmem %s992_s0, %s566_s14  ;;  %s237_s14 = sand.u32 1, %s760_s19  }
  0x20   : > { %v258_v6 = vld [vmem:[%s247_s17] sm:$0xf]  ;;  %s564_s15 = sshll.u32 %s237_s14, 2  ;;  %s574_s17 = sshll.u32 %s772_s22, 1 }
  0x21   : > { %588 = vmatprep.subr.msk.mxu0 %vm292_vm1, %v258_v6  ;;  %s477_s26 = sadd.s32 %s768_s21, %s574_s17  ;;  %s239_s8 = scalar_lea.vmem [#allocation2], %s564_s15 }
  0x22   : > { %589 = vmatpush3.msk.msra.mxu0 %vm292_vm1, %v258_v6  ;;  %s575_s16 = sshll.u32 %s477_s26, 6  ;;  %s481_s9 = sshll.u32 %s239_s8, 4  ;;  %s941_s9 = int_to_ptr.vmem [resolvable:$true] %s481_s9 }
  0x23   : > { %591 = vmatmul.mubr.msk.f32.vlgmr.msra.gmra.mrb[0].mxu0 %vm279_vm0, %v249_v7  ;;  %s939_s29 = scalar_lea.hbm %s997_s5, %s575_s16  ;;  %s466_s22 = scalar_lea.sflag [#allocation3], %s237_s14 }
  0x24   : > { %593 = vmatprep.mubr.msk.f32.mxu0 %vm279_vm0, %v250_v9  ;;  %s690_s21 = scalar_lea.vmem %s941_s9, 64  ;;  %s696_s13 = scalar_lea.vmem %s695_s12, 128 }
  0x25   : > { %p691_p0 = scmp.ne.s32.totalorder %s941_s9, %s690_s21  ;;  %p697_p4 = scmp.lt.s32.totalorder %s941_s9, %s695_s12 }
  0x26   : > { %p698_p5 = scmp.lt.s32.totalorder %s696_s13, %s690_s21 }
  0x27   : > { %594 = vmatmul.mubr.msk.f32.gmra.mrb[2].mxu0 %vm279_vm0, %v251_v10  ;;  %p692_p1 = pnand %p691_p0, %p872_p3 }
  0x28   : > { %p699_p6 = por %p698_p5, %p697_p4 }
  0x29   : > { %p693_p2 = pneg %p692_p1 }
  0x2b   : > { %p700_p7 = pnand %p699_p6, %p693_p2 }
  0x93   : > { %v262_v13 = vpop.permute.xlu0 %261 }
  0x94   : > { %v272_v14 = vpop.permute.xlu1 %271 }
  0x97   : > { %v267_v15 = vpop.permute.xlu0 %266 }
  0x98   : > { %v277_v21 = vpop.permute.xlu1 %276 }
  0x9b   : > { %v388_v32 = vpop.permute.xlu0 %387 }
  0xf6   : > { %v592_v16 = vpop.f32.mrb[0].mxu0 }
  0xf7   : > { %v368_v17 = vadd.f32 %v592_v16, %v267_v15  ;;  %v362_v18 = vpop.f32.mrb[1].mxu0 }
  0xf8   : > { %v363_v19 = vadd.f32 %v362_v18, %v262_v13 }
  0xf9   : > { %v382_v20 = vmax.f32 %v368_v17, 0.0 }
  0xfa   : > { %v381_v22 = vmax.f32 %v363_v19, 0.0  ;;  %v595_v23 = vpop.f32.mrb[2].mxu0 }
  0xfb   : > { %v378_v24 = vadd.f32 %v595_v23, %v277_v21  ;;  %v372_v25 = vpop.f32.mrb[3].mxu0 }
  0xfc   : > { %v373_v26 = vadd.f32 %v372_v25, %v272_v14  ;;  %v608_v27 = vpack.c.bf16 %v382_v20, %v381_v22 }
  0xfd   : > { %v384_v28 = vmax.f32 %v378_v24, 0.0 }
  0xfe   : > { %v383_v29 = vmax.f32 %v373_v26, 0.0  ;;  %609 = vmatpush3.bf16.msra.mxu1 %v608_v27 }
  0xff   : > { %610 = vmatprep.subr.bf16.mxu1 %v787_v11 }
 0x100   : > { %v611_v30 = vpack.c.bf16 %v384_v28, %v383_v29 }
 0x102   : > { %612 = vmatpush3.bf16.msra.mxu1 %v611_v30 }
 0x105   : > { %605 = vmatmul.mubr.msk.f32.vlgmr.msra.gmra.mrb[0].mxu1 %vm390_vm3, %v256_v31 }
 0x1d8   : > { %v460_v33 = vpop.f32.mrb[0].mxu1 }
 0x1d9   : > { %v461_v34 = vadd.f32 %v460_v33, %v388_v32  ;;  %v606_v35 = vpop.f32.mrb[1].mxu1 }
 0x1db   : > { %464 = vst [vmem:[%s239_s8] sm:$0xf] %v461_v34 }
 0x1dc   : > { %703 = shalt.err (!%p700_p7)
}
 0x1dd   : > { %s704_s14 = scalar_lea.hbm %s939_s29, 64  ;;  %s708_s26 = scalar_lea.hbm %s997_s5, 256 }
 0x1de   : > { %p705_p9 = scmp.ne.s32.totalorder %s939_s29, %s704_s14  ;;  %p709_p12 = scmp.lt.u32.totalorder %s939_s29, %s997_s5 }
 0x1df   : > { %p710_p13 = scmp.lt.u32.totalorder %s708_s26, %s704_s14  ;;  %p712_p1 = scmp.lt.u32.totalorder %s704_s14, %s939_s29 }
 0x1e0   : > { %p706_p10 = pnand %p705_p9, %p872_p3 }
 0x1e1   : > { %p711_p0 = por %p710_p13, %p709_p12 }
 0x1e2   : > { %p707_p11 = pneg %p706_p10 }
 0x1e3   : > { %p713_p2 = por %p712_p1, %p711_p0 }
 0x1e5   : > { %p714_p4 = pnand %p713_p2, %p707_p11 }
 0x1e7   : > { %717 = shalt.err (!%p714_p4)
}
 0x1e8   : > { %613 = dma.vmem_to_hbm [thread:$0]  (%p872_p3), %s941_s9, 64, %s939_s29, %s466_s22  }
 0x1e9 PF: > { %p619_p5 = scmp.ge.s32.totalorder %s784_s25, 2  ;;  %s493_s10 = sand.u32 1, %s756_s18  }
 0x1ea   : > { %s494_s27 = scalar_lea.sflag [#allocation3], %s493_s10 }
 0x1eb   : > { %p616_p6 = pnand %p619_p5, %p881_p8 }
 0x1ed   : > { %751 = dma.done.wait (!%p616_p6), %s494_s27, 64  }
 0x1ee   : > { %753 = vsyncadd (!%p616_p6), %s494_s27, 4294967232  ;;  %s18_s25 = sadd.s32 1, %s784_s25   ;;  %s1002_s6 = sld [smem:[#allocation5_spill]] }
 0x1ef   : > { %p15_p7 = scmp.ge.s32.totalorder %s18_s25, 6   ;;  %s1003_s18 = smov %s760_s19 }
 0x1f0   : > { %s1004_s19 = smov %s764_s20  ;;  %s1005_s20 = smov %s890_s11 }
 0x1f1   : > { %s1006_s21 = smov %s776_s23  ;;  %s1007_s22 = smov %s780_s24 }
 0x1f2   : > { %s1008_s23 = smov %s1011_s28  ;;  %17 = sbr.rel (!%p15_p7) target bundleno = 5 (0x5), region = 75 }
 0x1f4   : > { %s1009_s24 = smov %s1002_s6 }
 0x1f9   :  { %499 = vsyncpa [#allocation3], 1 }
 0x1fa   :  { %501 = vsyncpa [#allocation3 + $0x1], 1 }

</bundles_post_ra>
